<compile_context>
chip_gen: v5e
topology: v5e:2x2
jax: 0.10.0
libtpu: 0.0.40
codegen_flags: <defaults>
</compile_context>

<pallas_src>
import functools

import jax
import jax.numpy as jnp
from jax.experimental import pallas as pl
from jax.experimental.pallas import tpu as pltpu

HIDDEN = 256


def _round_up(x, m):
    return ((x + m - 1) // m) * m


def _pick_batch_tile(B, batch_tile=None):
    """Batch tile: multiple of 8 (16 when possible), <= B, >=2 steps for big B."""
    if B < 8:
        return B                                   # single full block (== array dim)
    if batch_tile is None:
        batch_tile = 1024 if B >= 4096 else 512    # amortize per-step overhead at large B
    tb = min(batch_tile, (B // 8) * 8)
    if B > 256:                                    # >= 2 grid steps -> both v7x TCs busy
        tb = min(tb, _round_up(pl.cdiv(B, 2), 8))
    if tb >= 16:                                   # bf16 packs 16 rows per vreg sublane group
        tb -= tb % 16
    return max(tb, 8)


def swerve_kernel(x_ref, w1_ref, b1_ref, w2_ref, b2_ref, wh_ref, bh_ref,
                  out_ref, *, action_dims):
    # Layer 1: Linear(input_dims, 256) + ReLU.  bf16 x bf16 -> f32 accumulate.
    x = x_ref[...].astype(jnp.bfloat16)            # no-op if caller already passes bf16
    h1 = jnp.dot(x, w1_ref[...], preferred_element_type=jnp.float32) + b1_ref[...]
    h1 = jnp.maximum(h1, 0.0).astype(jnp.bfloat16)

    # Layer 2: Linear(256, 256) + ReLU -> "features".
    h2 = jnp.dot(h1, w2_ref[...], preferred_element_type=jnp.float32) + b2_ref[...]
    h2 = jnp.maximum(h2, 0.0).astype(jnp.bfloat16)

    # Fused head: [means | std_pre | pad] = features @ [w3 | ws | 0] + [b3 | bs | 0]
    head = jnp.dot(h2, wh_ref[...], preferred_element_type=jnp.float32) + bh_ref[...]

    # Softplus only on std lanes (col >= action_dims); means lanes pass through.
    # Padding lanes also get softplus (EUP slot is free filler); wrapper discards them.
    col = jax.lax.broadcasted_iota(jnp.int32, head.shape, 1)
    softplus = jnp.maximum(head, 0.0) + jnp.log1p(jnp.exp(-jnp.abs(head)))
    out_ref[...] = jnp.where(col >= action_dims, softplus, head).astype(out_ref.dtype)


def prepare_params(params):
    """One-time weight prep: fuse the two head Linears into a single lane-dense
    (256, out_pad) matmul and cast matmul weights to bf16.  Call once."""
    A = params["w3"].shape[1]
    out_pad = _round_up(2 * A, 128)

    w_head = jnp.zeros((HIDDEN, out_pad), jnp.float32)
    w_head = w_head.at[:, :A].set(params["w3"]).at[:, A:2 * A].set(params["ws"])
    b_head = jnp.zeros((1, out_pad), jnp.float32)
    b_head = b_head.at[:, :A].set(params["b3"]).at[:, A:2 * A].set(params["bs"])

    return dict(
        w1=params["w1"].astype(jnp.bfloat16),
        b1=params["b1"].astype(jnp.float32),
        w2=params["w2"].astype(jnp.bfloat16),
        b2=params["b2"].astype(jnp.float32),
        w_head=w_head.astype(jnp.bfloat16),
        b_head=b_head,                      # biases stay f32 (added to f32 accumulators)
        action_dims=A,
        out_pad=out_pad,
    )


def swerve_nn_forward(state, prepped, *, batch_tile=None):
    """Fused forward pass.  state: (B, input_dims) float32 (or bfloat16).
    prepped: output of prepare_params().  Returns (action_means, action_stds),
    each (B, action_dims) float32."""
    B, input_dims = state.shape
    A = prepped["action_dims"]
    out_pad = prepped["out_pad"]

    tb = _pick_batch_tile(B, batch_tile)
    grid = (pl.cdiv(B, tb),)                # partial last block handled by Pallas
    const = lambda i: (0, 0)                # weights: same block every step (no re-DMA)

    out = pl.pallas_call(
        functools.partial(swerve_kernel, action_dims=A),
        out_shape=jax.ShapeDtypeStruct((B, out_pad), jnp.bfloat16),
        grid=grid,
        in_specs=[
            pl.BlockSpec((tb, input_dims), lambda i: (i, 0)),   # state (pipelined)
            pl.BlockSpec((input_dims, HIDDEN), const),          # w1
            pl.BlockSpec((1, HIDDEN), const),                   # b1
            pl.BlockSpec((HIDDEN, HIDDEN), const),              # w2
            pl.BlockSpec((1, HIDDEN), const),                   # b2
            pl.BlockSpec((HIDDEN, out_pad), const),             # w_head
            pl.BlockSpec((1, out_pad), const),                  # b_head
        ],
        out_specs=pl.BlockSpec((tb, out_pad), lambda i: (i, 0)),
        compiler_params=pltpu.CompilerParams(
            dimension_semantics=("parallel",),        # shard batch across v7x's 2 TCs
            vmem_limit_bytes=32 * 1024 * 1024),       # headroom for tb=1024 on v5e
    )(state, prepped["w1"], prepped["b1"], prepped["w2"], prepped["b2"],
      prepped["w_head"], prepped["b_head"])

    means = out[:, :A].astype(jnp.float32)
    stds = out[:, A:2 * A].astype(jnp.float32)
    return means, stds


def init_params(key, input_dims, action_dims):
    """PyTorch nn.Linear default init, stored transposed: W is (in, out)."""
    def linear(k, fan_in, fan_out):
        kw, kb = jax.random.split(k)
        bound = 1.0 / jnp.sqrt(fan_in)
        w = jax.random.uniform(kw, (fan_in, fan_out), jnp.float32, -bound, bound)
        b = jax.random.uniform(kb, (1, fan_out), jnp.float32, -bound, bound)
        return w, b

    k1, k2, k3, k4 = jax.random.split(key, 4)
    w1, b1 = linear(k1, input_dims, HIDDEN)
    w2, b2 = linear(k2, HIDDEN, HIDDEN)
    w3, b3 = linear(k3, HIDDEN, action_dims)
    ws, bs = linear(k4, HIDDEN, action_dims)
    return dict(w1=w1, b1=b1, w2=w2, b2=b2, w3=w3, b3=b3, ws=ws, bs=bs)


def reference_forward(state, params):
    """Plain-JAX (f32) reference of the PyTorch forward pass."""
    h1 = jnp.maximum(state @ params["w1"] + params["b1"], 0.0)
    h2 = jnp.maximum(h1 @ params["w2"] + params["b2"], 0.0)
    means = h2 @ params["w3"] + params["b3"]
    pre = h2 @ params["ws"] + params["bs"]
    stds = jnp.maximum(pre, 0.0) + jnp.log1p(jnp.exp(-jnp.abs(pre)))
    return means, stds


if __name__ == "__main__":
    key = jax.random.PRNGKey(0)
    k_param, k_state = jax.random.split(key)

    batch = 8
    input_dims = 32
    action_dims = 8

    params = init_params(k_param, input_dims, action_dims)
    prepped = prepare_params(params)        # one-time weight fusion + bf16 cast
    state = jax.random.normal(k_state, (batch, input_dims), dtype=jnp.float32)

    means, stds = swerve_nn_forward(state, prepped)
    jax.block_until_ready((means, stds))

    # Sanity-check against the f32 pure-JAX reference (bf16 matmuls + bf16
    # output => looser tolerance).
    ref_means, ref_stds = reference_forward(state, params)
    assert means.shape == (batch, action_dims)
    assert stds.shape == (batch, action_dims)
    assert jnp.allclose(means, ref_means, atol=3e-2, rtol=3e-2)
    assert jnp.allclose(stds, ref_stds, atol=3e-2, rtol=3e-2)
    assert jnp.all(stds >= 0.0)  # softplus output is non-negative

    print("KERNEL_OK")
</pallas_src>

<mosaic_0001>
module attributes {stable_mosaic.version = 11 : i64} {
  func.func @swerve_kernel(%arg0: i32, %arg1: memref<8x32xf32, #tpu.memory_space<vmem>>, %arg2: memref<32x256xbf16, #tpu.memory_space<vmem>>, %arg3: memref<1x256xf32, #tpu.memory_space<vmem>>, %arg4: memref<256x256xbf16, #tpu.memory_space<vmem>>, %arg5: memref<1x256xf32, #tpu.memory_space<vmem>>, %arg6: memref<256x128xbf16, #tpu.memory_space<vmem>>, %arg7: memref<1x128xf32, #tpu.memory_space<vmem>>, %arg8: memref<8x128xbf16, #tpu.memory_space<vmem>>) attributes {dimension_semantics = [#tpu.dimension_semantics<parallel>], iteration_bounds = array<i64: 1>, scalar_prefetch = 0 : i64, scratch_operands = 0 : i64, tpu.core_type = #tpu.core_type<tc>, window_params = [{transform_indices = @transform_0, window_bounds = array<i64: 8, 32>}, {pipeline_mode = #tpu.pipeline_mode<synchronous>, transform_indices = @transform_1, window_bounds = array<i64: 32, 256>}, {pipeline_mode = #tpu.pipeline_mode<synchronous>, transform_indices = @transform_2, window_bounds = array<i64: 1, 256>}, {pipeline_mode = #tpu.pipeline_mode<synchronous>, transform_indices = @transform_3, window_bounds = array<i64: 256, 256>}, {pipeline_mode = #tpu.pipeline_mode<synchronous>, transform_indices = @transform_4, window_bounds = array<i64: 1, 256>}, {pipeline_mode = #tpu.pipeline_mode<synchronous>, transform_indices = @transform_5, window_bounds = array<i64: 256, 128>}, {pipeline_mode = #tpu.pipeline_mode<synchronous>, transform_indices = @transform_6, window_bounds = array<i64: 1, 128>}, {transform_indices = @transform_7, window_bounds = array<i64: 8, 128>}]} {
    %c0 = arith.constant 0 : index
    %c0_0 = arith.constant 0 : index
    %0 = vector.load %arg1[%c0, %c0_0] : memref<8x32xf32, #tpu.memory_space<vmem>>, vector<8x32xf32>
    %1 = arith.truncf %0 : vector<8x32xf32> to vector<8x32xbf16>
    %c0_1 = arith.constant 0 : index
    %c0_2 = arith.constant 0 : index
    %2 = vector.load %arg2[%c0_1, %c0_2] : memref<32x256xbf16, #tpu.memory_space<vmem>>, vector<32x256xbf16>
    %cst = arith.constant dense<0.000000e+00> : vector<8x256xf32>
    %3 = tpu.matmul %1, %2, %cst {dimension_numbers = #tpu.dot_dimension_numbers<[1], [0], [0], [1], [0, 0, 1, 1], [], []>} : vector<8x32xbf16>, vector<32x256xbf16>, vector<8x256xf32> -> vector<8x256xf32>
    %c0_3 = arith.constant 0 : index
    %c0_4 = arith.constant 0 : index
    %4 = vector.load %arg3[%c0_3, %c0_4] : memref<1x256xf32, #tpu.memory_space<vmem>>, vector<1x256xf32>
    %5 = vector.broadcast %4 : vector<1x256xf32> to vector<8x256xf32>
    %6 = arith.addf %3, %5 : vector<8x256xf32>
    %cst_5 = arith.constant 0.000000e+00 : f32
    %7 = vector.broadcast %cst_5 : f32 to vector<8x256xf32>
    %8 = arith.maximumf %6, %7 : vector<8x256xf32>
    %9 = arith.truncf %8 : vector<8x256xf32> to vector<8x256xbf16>
    %c0_6 = arith.constant 0 : index
    %c0_7 = arith.constant 0 : index
    %10 = vector.load %arg4[%c0_6, %c0_7] : memref<256x256xbf16, #tpu.memory_space<vmem>>, vector<256x256xbf16>
    %cst_8 = arith.constant dense<0.000000e+00> : vector<8x256xf32>
    %11 = tpu.matmul %9, %10, %cst_8 {dimension_numbers = #tpu.dot_dimension_numbers<[1], [0], [0], [1], [0, 0, 1, 1], [], []>} : vector<8x256xbf16>, vector<256x256xbf16>, vector<8x256xf32> -> vector<8x256xf32>
    %c0_9 = arith.constant 0 : index
    %c0_10 = arith.constant 0 : index
    %12 = vector.load %arg5[%c0_9, %c0_10] : memref<1x256xf32, #tpu.memory_space<vmem>>, vector<1x256xf32>
    %13 = vector.broadcast %12 : vector<1x256xf32> to vector<8x256xf32>
    %14 = arith.addf %11, %13 : vector<8x256xf32>
    %cst_11 = arith.constant 0.000000e+00 : f32
    %15 = vector.broadcast %cst_11 : f32 to vector<8x256xf32>
    %16 = arith.maximumf %14, %15 : vector<8x256xf32>
    %17 = arith.truncf %16 : vector<8x256xf32> to vector<8x256xbf16>
    %c0_12 = arith.constant 0 : index
    %c0_13 = arith.constant 0 : index
    %18 = vector.load %arg6[%c0_12, %c0_13] : memref<256x128xbf16, #tpu.memory_space<vmem>>, vector<256x128xbf16>
    %cst_14 = arith.constant dense<0.000000e+00> : vector<8x128xf32>
    %19 = tpu.matmul %17, %18, %cst_14 {dimension_numbers = #tpu.dot_dimension_numbers<[1], [0], [0], [1], [0, 0, 1, 1], [], []>} : vector<8x256xbf16>, vector<256x128xbf16>, vector<8x128xf32> -> vector<8x128xf32>
    %c0_15 = arith.constant 0 : index
    %c0_16 = arith.constant 0 : index
    %20 = vector.load %arg7[%c0_15, %c0_16] : memref<1x128xf32, #tpu.memory_space<vmem>>, vector<1x128xf32>
    %21 = vector.broadcast %20 : vector<1x128xf32> to vector<8x128xf32>
    %22 = arith.addf %19, %21 : vector<8x128xf32>
    %23 = tpu.iota {dimensions = array<i32: 1>} : vector<8x128xi32>
    %cst_17 = arith.constant 0.000000e+00 : f32
    %24 = vector.broadcast %cst_17 : f32 to vector<8x128xf32>
    %25 = arith.maximumf %22, %24 : vector<8x128xf32>
    %26 = math.absf %22 : vector<8x128xf32>
    %cst_18 = arith.constant 0.000000e+00 : f32
    %27 = vector.broadcast %cst_18 : f32 to vector<8x128xf32>
    %28 = arith.subf %27, %26 : vector<8x128xf32>
    %29 = math.exp %28 : vector<8x128xf32>
    %30 = math.log1p %29 : vector<8x128xf32>
    %31 = arith.addf %25, %30 : vector<8x128xf32>
    %c8_i32 = arith.constant 8 : i32
    %32 = vector.broadcast %c8_i32 : i32 to vector<8x128xi32>
    %33 = arith.cmpi sge, %23, %32 : vector<8x128xi32>
    %34 = arith.select %33, %31, %22 : vector<8x128xi1>, vector<8x128xf32>
    %35 = arith.truncf %34 : vector<8x128xf32> to vector<8x128xbf16>
    %c0_19 = arith.constant 0 : index
    %c0_20 = arith.constant 0 : index
    %36 = vector.load %arg8[%c0_19, %c0_20] : memref<8x128xbf16, #tpu.memory_space<vmem>>, vector<8x128xbf16>
    tpu.vector_store %arg8[%c0_19, %c0_20], %35 {strides = array<i32>} : memref<8x128xbf16, #tpu.memory_space<vmem>>, vector<8x128xbf16>,
    return
  }
  func.func @transform_0(%arg0: i32) -> (i32, i32) {
    %c0_i32 = arith.constant 0 : i32
    %c0_i32_0 = arith.constant 0 : i32
    return %arg0, %c0_i32 : i32, i32
  }
  func.func @transform_1(%arg0: i32) -> (i32, i32) {
    %c0_i32 = arith.constant 0 : i32
    %c0_i32_0 = arith.constant 0 : i32
    %c0_i32_1 = arith.constant 0 : i32
    return %c0_i32, %c0_i32_0 : i32, i32
  }
  func.func @transform_2(%arg0: i32) -> (i32, i32) {
    %c0_i32 = arith.constant 0 : i32
    %c0_i32_0 = arith.constant 0 : i32
    %c0_i32_1 = arith.constant 0 : i32
    return %c0_i32, %c0_i32_0 : i32, i32
  }
  func.func @transform_3(%arg0: i32) -> (i32, i32) {
    %c0_i32 = arith.constant 0 : i32
    %c0_i32_0 = arith.constant 0 : i32
    %c0_i32_1 = arith.constant 0 : i32
    return %c0_i32, %c0_i32_0 : i32, i32
  }
  func.func @transform_4(%arg0: i32) -> (i32, i32) {
    %c0_i32 = arith.constant 0 : i32
    %c0_i32_0 = arith.constant 0 : i32
    %c0_i32_1 = arith.constant 0 : i32
    return %c0_i32, %c0_i32_0 : i32, i32
  }
  func.func @transform_5(%arg0: i32) -> (i32, i32) {
    %c0_i32 = arith.constant 0 : i32
    %c0_i32_0 = arith.constant 0 : i32
    %c0_i32_1 = arith.constant 0 : i32
    return %c0_i32, %c0_i32_0 : i32, i32
  }
  func.func @transform_6(%arg0: i32) -> (i32, i32) {
    %c0_i32 = arith.constant 0 : i32
    %c0_i32_0 = arith.constant 0 : i32
    %c0_i32_1 = arith.constant 0 : i32
    return %c0_i32, %c0_i32_0 : i32, i32
  }
  func.func @transform_7(%arg0: i32) -> (i32, i32) {
    %c0_i32 = arith.constant 0 : i32
    %c0_i32_0 = arith.constant 0 : i32
    return %arg0, %c0_i32 : i32, i32
  }
}

</mosaic_0001>

<bundles_post_ra>
// kernel: tpu_custom_call.1
= control target key start
LH: loop header
LB: loop body
LE: loop exit
PB: predicated region body
PF: predicated region fallthrough
CT: control target
= control target key end

     0   :  { %12 = vsyncpa [#allocation3], 0  ;;  %s1125_s0 = inlined_call_operand.hbm [shape: f32[8,32], index: 0, kind: input, shape index: {}]   ;;  %s1126_s1 = inlined_call_operand.hbm [shape: bf16[32,256], index: 1, kind: input, shape index: {}]   ;;  %s1127_s2 = inlined_call_operand.hbm [shape: f32[1,256], index: 2, kind: input, shape index: {}]   ;;  %s1128_s3 = inlined_call_operand.hbm [shape: bf16[256,256], index: 3, kind: input, shape index: {}]   ;;  %s1129_s4 = inlined_call_operand.vmem [shape: f32[1,256], index: 4, kind: input, shape index: {}]   ;;  %s1130_s5 = inlined_call_operand.hbm [shape: bf16[256,128], index: 5, kind: input, shape index: {}]   ;;  %s1131_s6 = inlined_call_operand.vmem [shape: f32[1,128], index: 6, kind: input, shape index: {}]   ;;  %s1132_s7 = inlined_call_operand.hbm [shape: bf16[8,128], index: 7, kind: output, shape index: {}]  }
   0x1   :  { %13 = vsyncpa [#allocation6], 0 }
   0x2   :  { %14 = vsyncpa [#allocation9], 0  ;;  %s31_s26 = sshll.u32 %s1126_s1, 4  ;;  %s32_s26 = int_to_ptr.hbm [resolvable:$true] %s31_s26 }
   0x3   :  { %15 = vsyncpa [#allocation4], 0  ;;  %s1049_s27 = smov [#allocation5]   ;;  %s55_s8 = sshll.u32 %s1128_s3, 4  ;;  %s56_s8 = int_to_ptr.hbm [resolvable:$true] %s55_s8 }
   0x4   :  { %s33_s28 = sshll.u32 %s1049_s27, 4  ;;  %s1050_s9 = smov 128   ;;  %s34_s28 = int_to_ptr.vmem [resolvable:$true] %s33_s28 }
   0x5   :  { %s1051_s10 = smov 8   ;;  %s1052_s11 = smov [#allocation8]  }
   0x6   :  { %39 = dma.hbm_to_vmem [thread:$0]  %s32_s26, 512, %s34_s28, [#allocation6], %s1050_s9, %s1050_s9, %s1051_s10  }
   0x7   :  { %s57_s12 = sshll.u32 %s1052_s11, 4  ;;  %s21_s15 = sshll.u32 %s1125_s0, 4  ;;  %s58_s12 = int_to_ptr.vmem [resolvable:$true] %s57_s12  ;;  %s22_s15 = int_to_ptr.hbm [resolvable:$true] %s21_s15 }
   0x8   :  { %63 = dma.hbm_to_vmem [thread:$0]  %s56_s8, 4096, %s58_s12, [#allocation9], %s1050_s9, %s1050_s9, %s1051_s10  }
   0x9   :  { %s45_s17 = sshll.u32 %s1127_s2, 4  ;;  %s1053_s18 = smov [#allocation2]   ;;  %s46_s17 = int_to_ptr.hbm [resolvable:$true] %s45_s17 }
   0xa   :  { %s23_s19 = sshll.u32 %s1053_s18, 4  ;;  %s1054_s3 = smov [#allocation7]   ;;  %s24_s19 = int_to_ptr.vmem [resolvable:$true] %s23_s19 }
   0xb   :  { %26 = dma.hbm_to_vmem [thread:$0]  %s22_s15, 128, %s24_s19, [#allocation3]  }
   0xc   :  { %s47_s20 = sshll.u32 %s1054_s3, 4  ;;  %s70_s23 = sshll.u32 %s1130_s5, 4  ;;  %s48_s20 = int_to_ptr.vmem [resolvable:$true] %s47_s20  ;;  %s71_s23 = int_to_ptr.hbm [resolvable:$true] %s70_s23 }
   0xd   :  { %50 = dma.hbm_to_vmem [thread:$0]  %s46_s17, 32, %s48_s20, [#allocation6]  }
   0xe   :  { %s1055_s0 = smov [#allocation10]   ;;  %s1056_s25 = smov 64  }
   0xf   :  { %s72_s24 = sshll.u32 %s1055_s0, 4  ;;  %s1057_s26 = smov 4   ;;  %s73_s24 = int_to_ptr.vmem [resolvable:$true] %s72_s24 }
  0x10   :  { %78 = dma.hbm_to_vmem [thread:$0]  %s71_s23, 2048, %s73_s24, [#allocation9], %s1056_s25, %s1056_s25, %s1057_s26  }
  0x11   :  { %1041 = dma.done.wait [#allocation3], 128  }
  0x12   :  { %1042 = vsyncadd [#allocation3], 4294967168 }
  0x13   :  { %1043 = dma.done.wait [#allocation6], 544  }
  0x14   :  { %1044 = vsyncadd [#allocation6], 4294966752 }
  0x15   :  { %1045 = dma.done.wait [#allocation9], 6144  }
  0x16   :  { %1046 = vsyncadd [#allocation9], 4294961152  ;;  %v630_v0 = vld [vmem:[#allocation5 + $0x10] sm:$0xf]  ;;  %v833_v1 = vld [vmem:[#allocation5 + $0x14] sm:$0xf0] }
  0x17   :  { %v832_v2 = vld [vmem:[#allocation5 + $0x14] sm:$0xf]  ;;  %v631_v3 = vor.u32 %v833_v1, %v630_v0  ;;  %v632_v4 = vld [vmem:[#allocation5 + $0x18] sm:$0xf0]  ;;  %v622_v5 = vld [vmem:[#allocation5] sm:$0xf] }
  0x18   :  { %v831_v6 = vld [vmem:[#allocation5 + $0x4] sm:$0xf0]  ;;  %v635_v7 = vor.u32 %v832_v2, %v632_v4  ;;  %v830_v8 = vld [vmem:[#allocation5 + $0x4] sm:$0xf]  ;;  %v624_v9 = vld [vmem:[#allocation5 + $0x8] sm:$0xf0] }
  0x19   :  { %v102_v10 = vld [vmem:[#allocation2] sm:$0xff]  ;;  %vm134_vm0 = vcmask 261120   ;;  %144 = vmatpush.bf16.msra.mxu0 %v631_v3  ;;  %v623_v11 = vor.u32 %v831_v6, %v622_v5  ;;  %v696_v12 = vld [vmem:[#allocation8 + $0x70] sm:$0xf]  ;;  %v627_v15 = vor.u32 %v830_v8, %v624_v9  ;;  %v688_v24 = vld [vmem:[#allocation8 + $0x60] sm:$0xf] }
  0x1a   :  { %v849_v13 = vld [vmem:[#allocation8 + $0x74] sm:$0xf0]  ;;  %v760_v14 = vld [vmem:[#allocation8 + $0xf0] sm:$0xf]  ;;  %157 = vmatpush.bf16.msra.mxu1 %v635_v7  ;;  %v848_v18 = vld [vmem:[#allocation8 + $0x74] sm:$0xf]  ;;  %v103_v25 = vpack.c.bf16 %v102_v10, %v102_v10 }
  0x1b   :  { %v697_v16 = vor.u32 %v849_v13, %v696_v12  ;;  %v865_v17 = vld [vmem:[#allocation8 + $0xf4] sm:$0xf0]  ;;  %v698_v19 = vld [vmem:[#allocation8 + $0x78] sm:$0xf0]  ;;  %v864_v22 = vld [vmem:[#allocation8 + $0xf4] sm:$0xf] }
  0x1c   :  { %v761_v20 = vor.u32 %v865_v17, %v760_v14  ;;  %v701_v21 = vor.u32 %v848_v18, %v698_v19  ;;  %v762_v23 = vld [vmem:[#allocation8 + $0xf8] sm:$0xf0]  ;;  %v847_v27 = vld [vmem:[#allocation8 + $0x64] sm:$0xf0]  ;;  %v752_v28 = vld [vmem:[#allocation8 + $0xe0] sm:$0xf] }
  0x1d   :  { %366 = vmatpush.bf16.msra.mxu2 %v697_v16  ;;  %v765_v26 = vor.u32 %v864_v22, %v762_v23  ;;  %v863_v29 = vld [vmem:[#allocation8 + $0xe4] sm:$0xf0]  ;;  %145 = vmatpush.bf16.msra.mxu0 %v623_v11  ;;  %v689_v30 = vor.u32 %v847_v27, %v688_v24  ;;  %v846_v32 = vld [vmem:[#allocation8 + $0x64] sm:$0xf]  ;;  %v690_v33 = vld [vmem:[#allocation8 + $0x68] sm:$0xf0] }
  0x1e   :  { %379 = vmatpush.bf16.msra.mxu3 %v761_v20  ;;  %v753_v31 = vor.u32 %v863_v29, %v752_v28  ;;  %v862_v34 = vld [vmem:[#allocation8 + $0xe4] sm:$0xf]  ;;  %158 = vmatpush.bf16.msra.mxu1 %v627_v15  ;;  %v693_v35 = vor.u32 %v846_v32, %v690_v33  ;;  %v754_v36 = vld [vmem:[#allocation8 + $0xe8] sm:$0xf0]  ;;  %v680_v37 = vld [vmem:[#allocation8 + $0x50] sm:$0xf] }
  0x1f   :  { %v845_v38 = vld [vmem:[#allocation8 + $0x54] sm:$0xf0]  ;;  %v757_v39 = vor.u32 %v862_v34, %v754_v36  ;;  %v744_v40 = vld [vmem:[#allocation8 + $0xd0] sm:$0xf]  ;;  %v844_v42 = vld [vmem:[#allocation8 + $0x54] sm:$0xf] }
  0x20   :  { %v861_v41 = vld [vmem:[#allocation8 + $0xd4] sm:$0xf0]  ;;  %636 = vmatmul.msk.bf16.vlgmr.msra.gmra.mxu0 %vm134_vm0, %v103_v25  ;;  %v681_v43 = vor.u32 %v845_v38, %v680_v37  ;;  %v682_v44 = vld [vmem:[#allocation8 + $0x58] sm:$0xf0]  ;;  %v860_v45 = vld [vmem:[#allocation8 + $0xd4] sm:$0xf] }
  0x21   :  { %392 = vmatpush.bf16.msrb.mxu0 %v701_v21  ;;  %367 = vmatpush.bf16.msra.mxu2 %v689_v30  ;;  %v746_v46 = vld [vmem:[#allocation8 + $0xd8] sm:$0xf0]  ;;  %v745_v47 = vor.u32 %v861_v41, %v744_v40  ;;  %v672_v48 = vld [vmem:[#allocation8 + $0x40] sm:$0xf]  ;;  %v843_v49 = vld [vmem:[#allocation8 + $0x44] sm:$0xf0]  ;;  %v685_v50 = vor.u32 %v844_v42, %v682_v44 }
  0x22   :  { %405 = vmatpush.bf16.msrb.mxu1 %v765_v26  ;;  %380 = vmatpush.bf16.msra.mxu3 %v753_v31  ;;  %v736_v51 = vld [vmem:[#allocation8 + $0xc0] sm:$0xf]  ;;  %v859_v52 = vld [vmem:[#allocation8 + $0xc4] sm:$0xf0]  ;;  %v749_v53 = vor.u32 %v860_v45, %v746_v46  ;;  %v842_v54 = vld [vmem:[#allocation8 + $0x44] sm:$0xf]  ;;  %v673_v56 = vor.u32 %v843_v49, %v672_v48 }
  0x23   :  { %637 = vmatmul.msk.bf16.vlgmr.msra.gmra.mxu1 %vm134_vm0, %v103_v25  ;;  %v674_v55 = vld [vmem:[#allocation8 + $0x48] sm:$0xf0]  ;;  %v858_v57 = vld [vmem:[#allocation8 + $0xc4] sm:$0xf]  ;;  %v737_v59 = vor.u32 %v859_v52, %v736_v51  ;;  %v664_v60 = vld [vmem:[#allocation8 + $0x30] sm:$0xf] }
  0x24   :  { %v738_v58 = vld [vmem:[#allocation8 + $0xc8] sm:$0xf0]  ;;  %v841_v61 = vld [vmem:[#allocation8 + $0x34] sm:$0xf0]  ;;  %v677_v62 = vor.u32 %v842_v54, %v674_v55  ;;  %v728_v63 = vld [vmem:[#allocation8 + $0xb0] sm:$0xf] }
  0x25   :  { %393 = vmatpush.bf16.msrb.mxu0 %v693_v35  ;;  %368 = vmatpush.bf16.msra.mxu2 %v681_v43  ;;  %v857_v0 = vld [vmem:[#allocation8 + $0xb4] sm:$0xf0]  ;;  %v741_v1 = vor.u32 %v858_v57, %v738_v58  ;;  %v840_v2 = vld [vmem:[#allocation8 + $0x34] sm:$0xf]  ;;  %v666_v3 = vld [vmem:[#allocation8 + $0x38] sm:$0xf0]  ;;  %v665_v4 = vor.u32 %v841_v61, %v664_v60 }
  0x26   :  { %406 = vmatpush.bf16.msrb.mxu1 %v757_v39  ;;  %381 = vmatpush.bf16.msra.mxu3 %v745_v47  ;;  %v856_v5 = vld [vmem:[#allocation8 + $0xb4] sm:$0xf]  ;;  %v730_v6 = vld [vmem:[#allocation8 + $0xb8] sm:$0xf0]  ;;  %v729_v7 = vor.u32 %v857_v0, %v728_v63  ;;  %v656_v8 = vld [vmem:[#allocation8 + $0x20] sm:$0xf]  ;;  %v669_v10 = vor.u32 %v840_v2, %v666_v3 }
  0x27   :  { %v839_v9 = vld [vmem:[#allocation8 + $0x24] sm:$0xf0]  ;;  %v720_v11 = vld [vmem:[#allocation8 + $0xa0] sm:$0xf]  ;;  %v733_v13 = vor.u32 %v856_v5, %v730_v6  ;;  %v838_v14 = vld [vmem:[#allocation8 + $0x24] sm:$0xf] }
  0x28   :  { %v855_v12 = vld [vmem:[#allocation8 + $0xa4] sm:$0xf0]  ;;  %v658_v15 = vld [vmem:[#allocation8 + $0x28] sm:$0xf0]  ;;  %v657_v16 = vor.u32 %v839_v9, %v656_v8  ;;  %v854_v17 = vld [vmem:[#allocation8 + $0xa4] sm:$0xf] }
  0x29   :  { %394 = vmatpush.bf16.msrb.mxu0 %v685_v50  ;;  %369 = vmatpush.bf16.msra.mxu2 %v673_v56  ;;  %v722_v18 = vld [vmem:[#allocation8 + $0xa8] sm:$0xf0]  ;;  %v721_v19 = vor.u32 %v855_v12, %v720_v11  ;;  %v661_v20 = vor.u32 %v838_v14, %v658_v15  ;;  %v648_v22 = vld [vmem:[#allocation8 + $0x10] sm:$0xf]  ;;  %v837_v23 = vld [vmem:[#allocation8 + $0x14] sm:$0xf0] }
  0x2a   :  { %407 = vmatpush.bf16.msrb.mxu1 %v749_v53  ;;  %382 = vmatpush.bf16.msra.mxu3 %v737_v59  ;;  %v725_v21 = vor.u32 %v854_v17, %v722_v18  ;;  %v712_v24 = vld [vmem:[#allocation8 + $0x90] sm:$0xf]  ;;  %v649_v25 = vor.u32 %v837_v23, %v648_v22  ;;  %v853_v26 = vld [vmem:[#allocation8 + $0x94] sm:$0xf0]  ;;  %v836_v27 = vld [vmem:[#allocation8 + $0x14] sm:$0xf] }
  0x2b   :  { %v650_v28 = vld [vmem:[#allocation8 + $0x18] sm:$0xf0]  ;;  %v713_v29 = vor.u32 %v853_v26, %v712_v24  ;;  %v852_v31 = vld [vmem:[#allocation8 + $0x94] sm:$0xf]  ;;  %v640_v34 = vld [vmem:[#allocation8] sm:$0xf] }
  0x2c   :  { %v653_v30 = vor.u32 %v836_v27, %v650_v28  ;;  %v714_v32 = vld [vmem:[#allocation8 + $0x98] sm:$0xf0]  ;;  %v835_v35 = vld [vmem:[#allocation8 + $0x4] sm:$0xf0]  ;;  %v704_v36 = vld [vmem:[#allocation8 + $0x80] sm:$0xf] }
  0x2d   :  { %395 = vmatpush.bf16.msrb.mxu0 %v677_v62  ;;  %370 = vmatpush.bf16.msra.mxu2 %v665_v4  ;;  %v717_v33 = vor.u32 %v852_v31, %v714_v32  ;;  %v641_v37 = vor.u32 %v835_v35, %v640_v34  ;;  %v851_v38 = vld [vmem:[#allocation8 + $0x84] sm:$0xf0]  ;;  %v834_v39 = vld [vmem:[#allocation8 + $0x4] sm:$0xf]  ;;  %v642_v40 = vld [vmem:[#allocation8 + $0x8] sm:$0xf0] }
  0x2e   :  { %408 = vmatpush.bf16.msrb.mxu1 %v741_v1  ;;  %383 = vmatpush.bf16.msra.mxu3 %v729_v7  ;;  %v705_v41 = vor.u32 %v851_v38, %v704_v36  ;;  %v645_v42 = vor.u32 %v834_v39, %v642_v40  ;;  %v850_v43 = vld [vmem:[#allocation8 + $0x84] sm:$0xf]  ;;  %v706_v44 = vld [vmem:[#allocation8 + $0x88] sm:$0xf0]  ;;  %v881_v46 = vld [vmem:[#allocation10 + $0x78] sm:$0xff]  ;;  %s608_s8 = sshll.u32 %s1132_s7, 4  ;;  %s609_s8 = int_to_ptr.hbm [resolvable:$true] %s608_s8 }
  0x2f   :  { %v709_v45 = vor.u32 %v850_v43, %v706_v44  ;;  %v873_v47 = vld [vmem:[#allocation10 + $0x38] sm:$0xff]  ;;  %v880_v48 = vld [vmem:[#allocation10 + $0x70] sm:$0xff]  ;;  %v879_v50 = vld [vmem:[#allocation10 + $0x68] sm:$0xff]  ;;  %v580_v43 = vlaneseq }
  0x30   :  { %v872_v49 = vld [vmem:[#allocation10 + $0x30] sm:$0xff]  ;;  %v871_v51 = vld [vmem:[#allocation10 + $0x28] sm:$0xff]  ;;  %v878_v52 = vld [vmem:[#allocation10 + $0x60] sm:$0xff] }
  0x31   :  { %396 = vmatpush.bf16.msrb.mxu0 %v669_v10  ;;  %371 = vmatpush.bf16.msra.mxu2 %v657_v16  ;;  %v870_v53 = vld [vmem:[#allocation10 + $0x20] sm:$0xff]  ;;  %v877_v54 = vld [vmem:[#allocation10 + $0x58] sm:$0xff]  ;;  %v876_v56 = vld [vmem:[#allocation10 + $0x50] sm:$0xff] }
  0x32   :  { %409 = vmatpush.bf16.msrb.mxu1 %v733_v13  ;;  %384 = vmatpush.bf16.msra.mxu3 %v721_v19  ;;  %v108_v55 = vld [vmem:[#allocation7] sm:$0x3]  ;;  %v875_v6 = vld [vmem:[#allocation10 + $0x48] sm:$0xff]  ;;  %v868_v7 = vld [vmem:[#allocation10 + $0x10] sm:$0xff] }
  0x33   :  { %v110_v57 = vperm.slane %v108_v55, 0  ;;  %v111_v58 = vperm.slane %v108_v55, 1  ;;  %v869_v5 = vld [vmem:[#allocation10 + $0x18] sm:$0xff]  ;;  %v874_v8 = vld [vmem:[#allocation10 + $0x40] sm:$0xff]  ;;  %v867_v9 = vld [vmem:[#allocation10 + $0x8] sm:$0xff] }
  0x34   :  { %v866_v10 = vld [vmem:[#allocation10] sm:$0xff]  ;;  %v200_v11 = vld [vmem:[%s1129_s4] sm:$0x3] }
  0x35   :  { %397 = vmatpush.bf16.msrb.mxu0 %v661_v20  ;;  %372 = vmatpush.bf16.msra.mxu2 %v649_v25  ;;  %v203_v12 = vperm.slane %v200_v11, 1  ;;  %v202_v17 = vperm.slane %v200_v11, 0  ;;  %v892_v31 = vld [vmem:[%s1131_s6] ss:$0 sm:$0xff]  ;;  %s1058_s6 = smov [#allocation11]  }
  0x36   :  { %410 = vmatpush.bf16.msrb.mxu1 %v725_v21  ;;  %385 = vmatpush.bf16.msra.mxu3 %v713_v29  ;;  %s606_s28 = sshll.u32 %s1058_s6, 4  ;;  %s607_s28 = int_to_ptr.vmem [resolvable:$true] %s606_s28 }
  0x39   :  { %398 = vmatpush.bf16.msrb.mxu0 %v653_v30  ;;  %373 = vmatpush.bf16.msra.mxu2 %v641_v37 }
  0x3a   :  { %411 = vmatpush.bf16.msrb.mxu1 %v717_v33  ;;  %386 = vmatpush.bf16.msra.mxu3 %v705_v41 }
  0x3d   :  { %399 = vmatpush.bf16.msrb.mxu0 %v645_v42  ;;  %554 = vmatpush.bf16.msrb.mxu2 %v873_v47 }
  0x3e   :  { %412 = vmatpush.bf16.msrb.mxu1 %v709_v45  ;;  %567 = vmatpush.bf16.msrb.mxu3 %v881_v46  ;;  %v581_v46 = vand.u32 127, %v580_v43 }
  0x40   :  { %vm597_vm2 = vcmp.ge.s32.totalorder %v581_v46, 8 }
  0x41   :  { %555 = vmatpush.bf16.msrb.mxu2 %v872_v49 }
  0x42   :  { %568 = vmatpush.bf16.msrb.mxu3 %v880_v48 }
  0x45   :  { %556 = vmatpush.bf16.msrb.mxu2 %v871_v51 }
  0x46   :  { %569 = vmatpush.bf16.msrb.mxu3 %v879_v50 }
  0x49   :  { %557 = vmatpush.bf16.msrb.mxu2 %v870_v53 }
  0x4a   :  { %570 = vmatpush.bf16.msrb.mxu3 %v878_v52 }
  0x4d   :  { %558 = vmatpush.bf16.msrb.mxu2 %v869_v5 }
  0x4e   :  { %571 = vmatpush.bf16.msrb.mxu3 %v877_v54 }
  0x51   :  { %559 = vmatpush.bf16.msrb.mxu2 %v868_v7 }
  0x52   :  { %572 = vmatpush.bf16.msrb.mxu3 %v876_v56 }
  0x55   :  { %560 = vmatpush.bf16.msrb.mxu2 %v867_v9 }
  0x56   :  { %573 = vmatpush.bf16.msrb.mxu3 %v875_v6 }
  0x59   :  { %561 = vmatpush.bf16.msrb.mxu2 %v866_v10 }
  0x5a   :  { %574 = vmatpush.bf16.msrb.mxu3 %v874_v8 }
  0x9d   :  { %v147_v59 = vpop.f32.mrf.mxu0 }
  0x9e   :  { %v148_v60 = vadd.f32 %v147_v59, %v110_v57 }
  0xa0   :  { %v160_v61 = vpop.f32.mrf.mxu1  ;;  %v164_v63 = vmax.f32 %v148_v60, 0.0 }
  0xa1   :  { %v161_v62 = vadd.f32 %v160_v61, %v111_v58 }
  0xa2   :  { %v166_v1 = vpack.c.bf16 %v164_v63, %v164_v63 }
  0xa3   :  { %v165_v0 = vmax.f32 %v161_v62, 0.0 }
  0xa4   :  { %374 = vmatmul.bf16.vlgmr.msra.gmra.mxu2 %v166_v1  ;;  %400 = vmatmul.bf16.vlgmr.msrb.gmra.mxu0 %v166_v1 }
  0xa5   :  { %v167_v2 = vpack.c.bf16 %v165_v0, %v165_v0  ;;  %v149_v3 = vpop.f32.mrf.mxu0 }
  0xa7   :  { %387 = vmatmul.bf16.vlgmr.msra.gmra.mxu3 %v167_v2  ;;  %413 = vmatmul.bf16.vlgmr.msrb.gmra.mxu1 %v167_v2 }
  0xa8   :  { %v162_v4 = vpop.f32.mrf.mxu1 }
 0x121   :  { %v401_v13 = vpop.f32.mrf.mxu0 }
 0x122   :  { %v402_v14 = vadd.f32 %v401_v13, %v203_v12 }
 0x124   :  { %v414_v15 = vpop.f32.mrf.mxu1 }
 0x125   :  { %v415_v16 = vadd.f32 %v414_v15, %v402_v14 }
 0x127   :  { %v419_v18 = vmax.f32 %v415_v16, 0.0  ;;  %v375_v19 = vpop.f32.mrf.mxu2 }
 0x128   :  { %v376_v21 = vadd.f32 %v375_v19, %v202_v17 }
 0x129   :  { %v421_v20 = vpack.c.bf16 %v419_v18, %v419_v18  ;;  %v403_v23 = vpop.f32.mrf.mxu0 }
 0x12a   :  { %v388_v22 = vpop.f32.mrf.mxu3 }
 0x12b   :  { %v389_v24 = vadd.f32 %v388_v22, %v376_v21  ;;  %575 = vmatmul.bf16.vlgmr.msrb.gmra.mxu3 %v421_v20 }
 0x12c   :  { %v416_v25 = vpop.f32.mrf.mxu1 }
 0x12d   :  { %v418_v26 = vmax.f32 %v389_v24, 0.0 }
 0x12f   :  { %v420_v27 = vpack.c.bf16 %v418_v26, %v418_v26  ;;  %v377_v28 = vpop.f32.mrf.mxu2 }
 0x131   :  { %562 = vmatmul.bf16.vlgmr.msrb.gmra.mxu2 %v420_v27 }
 0x132   :  { %v390_v29 = vpop.f32.mrf.mxu3 }
 0x1ae   :  { %v576_v30 = vpop.f32.mrf.mxu3 }
 0x1b4   :  { %v563_v32 = vpop.f32.mrf.mxu2 }
 0x1b5   :  { %v564_v33 = vadd.f32 %v892_v31, %v563_v32 }
 0x1b6   :  { %v578_v34 = vpop.f32.mrf.mxu3 }
 0x1b7   :  { %v577_v35 = vadd.f32 %v576_v30, %v564_v33 }
 0x1b9   :  { %v583_v36 = vand.u32 2147483647, %v577_v35  ;;  %v582_v50 = vmax.f32 %v577_v35, 0.0 }
 0x1bb   :  { %v584_v37 = vsub.f32 0.0, %v583_v36 }
 0x1bc   :  { %v565_v38 = vpop.f32.mrf.mxu2 }
 0x1bd   :  { %v585_v39 = vmul.f32 1.442695, %v584_v37 }
 0x1bf   :  { %893 = vpow2.f32 %v585_v39 }
 0x1c5   :  { %v894_v40 = vpop.eup %893 }
 0x1c6   :  { %v587_v41 = vadd.f32 1.0, %v894_v40  ;;  %v590_v42 = vmul.f32 -0.5, %v894_v40  ;;  %v593_v45 = vand.u32 2147483647, %v894_v40 }
 0x1c8   :  { %895 = vlog2.f32 %v587_v41  ;;  %v591_v44 = vadd.f32 1.0, %v590_v42  ;;  %vm594_vm1 = vcmp.lt.f32.partialorder %v593_v45, 0.0004427343 }
 0x1ca   :  { %v592_v49 = vmul.f32 %v894_v40, %v591_v44 }
 0x1ce   :  { %v896_v47 = vpop.eup %895 }
 0x1cf   :  { %v589_v48 = vmul.f32 0.6931472, %v896_v47 }
 0x1d1   :  { %v595_v51 = vsel %vm594_vm1, %v592_v49, %v589_v48 }
 0x1d2   :  { %v596_v52 = vadd.f32 %v595_v51, %v582_v50 }
 0x1d4   :  { %v598_v53 = vsel %vm597_vm2, %v596_v52, %v577_v35 }
 0x1d5   :  { %v599_v54 = vpack.c.bf16 %v598_v53, %v598_v53 }
 0x1d7   :  { %600 = vst [vmem:[#allocation11] sm:$0xf] %v599_v54 }
 0x1d8   :  { %611 = dma.vmem_to_hbm [thread:$0]  %s607_s28, 64, %s609_s8, [#allocation4]  }
 0x1d9   :  { %1047 = dma.done.wait [#allocation4], 64  }
 0x1da   :  { %1048 = vsyncadd [#allocation4], 4294967232 }
 0x1db   :  { %616 = vsyncpa [#allocation3], 1 }
 0x1dc   :  { %617 = vsyncpa [#allocation6], 1 }
 0x1dd   :  { %618 = vsyncpa [#allocation9], 1 }
 0x1de   :  { %619 = vsyncpa [#allocation4], 1 }

</bundles_post_ra>
